<compile_context>
chip_gen: v7x
topology: tpu7x:2x2x1
jax: 0.10.0
libtpu: 0.0.40
codegen_flags: <defaults>
</compile_context>

<pallas_src>
import jax
import jax.numpy as jnp
from jax.experimental import pallas as pl
from jax.experimental.pallas import tpu as pltpu


def _round_up(v: int, m: int) -> int:
    return (v + m - 1) // m * m


def _fc_block_kernel(x_ref, w1_ref, b1_ref, w2_ref, b2_ref, o_ref):
    # fc1: (TB, D_in_p) @ (D_in_p, D_hid_p) + b1  (MXU, f32 accumulation)
    h = jnp.dot(x_ref[...], w1_ref[...], preferred_element_type=jnp.float32)
    # bias + tanh in f32 (tanh goes to the EUP)
    h = jnp.tanh(h + b1_ref[...])
    # fc2: (TB, D_hid_p) @ (D_hid_p, D_cls_p) + b2
    # NOTE: if weights are ever stored in bf16, this astype downcasts the tanh
    # activations before the second matmul (accumulation stays f32).
    out = jnp.dot(h.astype(w2_ref.dtype), w2_ref[...],
                  preferred_element_type=jnp.float32)
    o_ref[...] = (out + b2_ref[...]).astype(o_ref.dtype)


def fully_connected_block(x, w1, b1, w2, b2, *, max_rows_per_block: int = 256):
    """x: (N, C, H, W) float32.  Returns (N, num_classes) float32.

    w1: (D_in, D_hid), b1: (D_hid,), w2: (D_hid, D_cls), b2: (D_cls,)
    (weights already transposed vs. torch's nn.Linear [out, in] storage).
    """
    n = x.shape[0]
    d_in, d_hid = w1.shape
    d_cls = w2.shape[1]

    x2d = x.reshape(n, -1).astype(jnp.float32)
    assert x2d.shape[1] == d_in, (x2d.shape, d_in)

    # ---- lane/sublane-dense padded shapes (zero padding is exact) ----------
    d_in_p = _round_up(d_in, 128)
    d_hid_p = _round_up(d_hid, 128)
    d_cls_p = _round_up(d_cls, 128)

    # Rows: pad batch to a multiple of 8 sublanes, tile in blocks of up to
    # `max_rows_per_block` rows (big tiles amortize the ~0.35us/step overhead).
    n8 = _round_up(n, 8)
    tb = min(max_rows_per_block, n8)
    n_pad = _round_up(n, tb)

    x_p = jnp.zeros((n_pad, d_in_p), jnp.float32).at[:n, :d_in].set(x2d)
    w1_p = jnp.zeros((d_in_p, d_hid_p), jnp.float32).at[:d_in, :d_hid].set(
        w1.astype(jnp.float32))
    b1_p = jnp.zeros((1, d_hid_p), jnp.float32).at[0, :d_hid].set(
        b1.astype(jnp.float32))
    w2_p = jnp.zeros((d_hid_p, d_cls_p), jnp.float32).at[:d_hid, :d_cls].set(
        w2.astype(jnp.float32))
    b2_p = jnp.zeros((1, d_cls_p), jnp.float32).at[0, :d_cls].set(
        b2.astype(jnp.float32))

    grid = (n_pad // tb,)

    cost = pl.CostEstimate(
        flops=2 * n_pad * (d_in_p * d_hid_p + d_hid_p * d_cls_p),
        transcendentals=n_pad * d_hid_p,
        bytes_accessed=4 * (n_pad * d_in_p + d_in_p * d_hid_p + d_hid_p
                            + d_hid_p * d_cls_p + d_cls_p + n_pad * d_cls_p),
    )

    out_p = pl.pallas_call(
        _fc_block_kernel,
        out_shape=jax.ShapeDtypeStruct((n_pad, d_cls_p), jnp.float32),
        grid_spec=pl.GridSpec(
            grid=grid,
            in_specs=[
                # x streams over batch blocks.
                pl.BlockSpec((tb, d_in_p), lambda i: (i, 0)),
                # Weights / biases stay resident across all grid steps.
                pl.BlockSpec((d_in_p, d_hid_p), lambda i: (0, 0)),
                pl.BlockSpec((1, d_hid_p), lambda i: (0, 0)),
                pl.BlockSpec((d_hid_p, d_cls_p), lambda i: (0, 0)),
                pl.BlockSpec((1, d_cls_p), lambda i: (0, 0)),
            ],
            out_specs=pl.BlockSpec((tb, d_cls_p), lambda i: (i, 0)),
        ),
        compiler_params=pltpu.CompilerParams(
            dimension_semantics=("parallel",)),
        cost_estimate=cost,
    )(x_p, w1_p, b1_p, w2_p, b2_p)

    # Strip row/lane padding.
    return out_p[:n, :d_cls]


def _reference(x, w1, b1, w2, b2):
    x2d = x.reshape(x.shape[0], -1)
    h = jnp.tanh(x2d @ w1 + b1)
    return h @ w2 + b2


if __name__ == "__main__":
    # LeNet-style FC head at small scale.
    batch, C, H, W = 2, 4, 8, 8
    input_size = C * H * W          # 256
    output_size = 32
    num_classes = 10

    key = jax.random.PRNGKey(0)
    kx, kw1, kb1, kw2, kb2 = jax.random.split(key, 5)

    x = jax.random.normal(kx, (batch, C, H, W), dtype=jnp.float32)

    # Deterministic synthetic parameters (nn.Linear-like scale), stored as
    # (in, out) so the kernel computes x @ W directly.
    s1 = 1.0 / jnp.sqrt(input_size)
    w1 = jax.random.uniform(kw1, (input_size, output_size), jnp.float32, -s1, s1)
    b1 = jax.random.uniform(kb1, (output_size,), jnp.float32, -s1, s1)
    s2 = 1.0 / jnp.sqrt(output_size)
    w2 = jax.random.uniform(kw2, (output_size, num_classes), jnp.float32, -s2, s2)
    b2 = jax.random.uniform(kb2, (num_classes,), jnp.float32, -s2, s2)

    out = fully_connected_block(x, w1, b1, w2, b2)
    out = jax.block_until_ready(out)

    ref = _reference(x, w1, b1, w2, b2)
    assert out.shape == (batch, num_classes), out.shape
    assert jnp.allclose(out, ref, atol=1e-5, rtol=1e-5), (
        float(jnp.max(jnp.abs(out - ref))))

    print("KERNEL_OK")
</pallas_src>

<mosaic_0001>
module attributes {stable_mosaic.version = 11 : i64} {
  func.func @_fc_block_kernel(%arg0: i32, %arg1: memref<8x256xf32, #tpu.memory_space<vmem>>, %arg2: memref<256x128xf32, #tpu.memory_space<vmem>>, %arg3: memref<1x128xf32, #tpu.memory_space<vmem>>, %arg4: memref<128x128xf32, #tpu.memory_space<vmem>>, %arg5: memref<1x128xf32, #tpu.memory_space<vmem>>, %arg6: memref<8x128xf32, #tpu.memory_space<vmem>>) attributes {dimension_semantics = [#tpu.dimension_semantics<parallel>], iteration_bounds = array<i64: 1>, scalar_prefetch = 0 : i64, scratch_operands = 0 : i64, tpu.core_type = #tpu.core_type<tc>, window_params = [{transform_indices = @transform_0, window_bounds = array<i64: 8, 256>}, {pipeline_mode = #tpu.pipeline_mode<synchronous>, transform_indices = @transform_1, window_bounds = array<i64: 256, 128>}, {pipeline_mode = #tpu.pipeline_mode<synchronous>, transform_indices = @transform_2, window_bounds = array<i64: 1, 128>}, {pipeline_mode = #tpu.pipeline_mode<synchronous>, transform_indices = @transform_3, window_bounds = array<i64: 128, 128>}, {pipeline_mode = #tpu.pipeline_mode<synchronous>, transform_indices = @transform_4, window_bounds = array<i64: 1, 128>}, {transform_indices = @transform_5, window_bounds = array<i64: 8, 128>}]} {
    %c0 = arith.constant 0 : index
    %c0_0 = arith.constant 0 : index
    %0 = vector.load %arg1[%c0, %c0_0] : memref<8x256xf32, #tpu.memory_space<vmem>>, vector<8x256xf32>
    %c0_1 = arith.constant 0 : index
    %c0_2 = arith.constant 0 : index
    %1 = vector.load %arg2[%c0_1, %c0_2] : memref<256x128xf32, #tpu.memory_space<vmem>>, vector<256x128xf32>
    %cst = arith.constant dense<0.000000e+00> : vector<8x128xf32>
    %2 = tpu.matmul %0, %1, %cst {dimension_numbers = #tpu.dot_dimension_numbers<[1], [0], [0], [1], [0, 0, 1, 1], [], []>} : vector<8x256xf32>, vector<256x128xf32>, vector<8x128xf32> -> vector<8x128xf32>
    %c0_3 = arith.constant 0 : index
    %c0_4 = arith.constant 0 : index
    %3 = vector.load %arg3[%c0_3, %c0_4] : memref<1x128xf32, #tpu.memory_space<vmem>>, vector<1x128xf32>
    %4 = vector.broadcast %3 : vector<1x128xf32> to vector<8x128xf32>
    %5 = arith.addf %2, %4 : vector<8x128xf32>
    %6 = math.tanh %5 : vector<8x128xf32>
    %c0_5 = arith.constant 0 : index
    %c0_6 = arith.constant 0 : index
    %7 = vector.load %arg4[%c0_5, %c0_6] : memref<128x128xf32, #tpu.memory_space<vmem>>, vector<128x128xf32>
    %cst_7 = arith.constant dense<0.000000e+00> : vector<8x128xf32>
    %8 = tpu.matmul %6, %7, %cst_7 {dimension_numbers = #tpu.dot_dimension_numbers<[1], [0], [0], [1], [0, 0, 1, 1], [], []>} : vector<8x128xf32>, vector<128x128xf32>, vector<8x128xf32> -> vector<8x128xf32>
    %c0_8 = arith.constant 0 : index
    %c0_9 = arith.constant 0 : index
    %9 = vector.load %arg5[%c0_8, %c0_9] : memref<1x128xf32, #tpu.memory_space<vmem>>, vector<1x128xf32>
    %10 = vector.broadcast %9 : vector<1x128xf32> to vector<8x128xf32>
    %11 = arith.addf %8, %10 : vector<8x128xf32>
    %c0_10 = arith.constant 0 : index
    %c0_11 = arith.constant 0 : index
    %12 = vector.load %arg6[%c0_10, %c0_11] : memref<8x128xf32, #tpu.memory_space<vmem>>, vector<8x128xf32>
    tpu.vector_store %arg6[%c0_10, %c0_11], %11 {strides = array<i32>} : memref<8x128xf32, #tpu.memory_space<vmem>>, vector<8x128xf32>,
    return
  }
  func.func @transform_0(%arg0: i32) -> (i32, i32) {
    %c0_i32 = arith.constant 0 : i32
    %c0_i32_0 = arith.constant 0 : i32
    return %arg0, %c0_i32 : i32, i32
  }
  func.func @transform_1(%arg0: i32) -> (i32, i32) {
    %c0_i32 = arith.constant 0 : i32
    %c0_i32_0 = arith.constant 0 : i32
    %c0_i32_1 = arith.constant 0 : i32
    return %c0_i32, %c0_i32_0 : i32, i32
  }
  func.func @transform_2(%arg0: i32) -> (i32, i32) {
    %c0_i32 = arith.constant 0 : i32
    %c0_i32_0 = arith.constant 0 : i32
    %c0_i32_1 = arith.constant 0 : i32
    return %c0_i32, %c0_i32_0 : i32, i32
  }
  func.func @transform_3(%arg0: i32) -> (i32, i32) {
    %c0_i32 = arith.constant 0 : i32
    %c0_i32_0 = arith.constant 0 : i32
    %c0_i32_1 = arith.constant 0 : i32
    return %c0_i32, %c0_i32_0 : i32, i32
  }
  func.func @transform_4(%arg0: i32) -> (i32, i32) {
    %c0_i32 = arith.constant 0 : i32
    %c0_i32_0 = arith.constant 0 : i32
    %c0_i32_1 = arith.constant 0 : i32
    return %c0_i32, %c0_i32_0 : i32, i32
  }
  func.func @transform_5(%arg0: i32) -> (i32, i32) {
    %c0_i32 = arith.constant 0 : i32
    %c0_i32_0 = arith.constant 0 : i32
    return %arg0, %c0_i32 : i32, i32
  }
}

</mosaic_0001>

<bundles_post_ra>
// kernel: tpu_custom_call.1
= control target key start
LH: loop header
LB: loop body
LE: loop exit
PB: predicated region body
PF: predicated region fallthrough
CT: control target
= control target key end

     0   :  { %10 = vsyncpa [#allocation3], 0  ;;  %s639_s0 = inlined_call_operand.hbm [shape: f32[8,256], index: 0, kind: input, shape index: {}]   ;;  %s640_s1 = inlined_call_operand.hbm [shape: f32[256,128], index: 1, kind: input, shape index: {}]   ;;  %s641_s2 = inlined_call_operand.vmem [shape: f32[1,128], index: 2, kind: input, shape index: {}]   ;;  %s642_s3 = inlined_call_operand.hbm [shape: f32[128,128], index: 3, kind: input, shape index: {}]   ;;  %s643_s4 = inlined_call_operand.vmem [shape: f32[1,128], index: 4, kind: input, shape index: {}]   ;;  %s644_s5 = inlined_call_operand.hbm [shape: f32[8,128], index: 5, kind: output, shape index: {}]  }
   0x1   :  { %11 = vsyncpa [#allocation6], 0 }
   0x2   :  { %12 = vsyncpa [#allocation4], 0  ;;  %s532_s18 = smov [#allocation5]   ;;  %s438_s22 = scalar_lea.hbm %s640_s1, 4096 }
   0x3   :  { %s28_s19 = sshll.u32 %s532_s18, 4  ;;  %p439_p0 = scmp.ne.s32.totalorder %s640_s1, %s438_s22  ;;  %s29_s19 = int_to_ptr.vmem [resolvable:$true] %s28_s19 }
   0x4   :  { %p442_p1 = scmp.lt.u32.totalorder %s438_s22, %s640_s1 }
   0x6   :  { %p444_p2 = pnand %p442_p1, %p439_p0 }
   0x8   :  { %447 = shalt.err (!%p444_p2)
}
   0x9   :  { %s448_s27 = scalar_lea.vmem %s29_s19, 4096  ;;  %p453_p4 = scmp.lt.s32.totalorder %s29_s19, %s29_s19 }
   0xa   :  { %p449_p3 = scmp.ne.s32.totalorder %s29_s19, %s448_s27  ;;  %p454_p5 = scmp.lt.s32.totalorder %s448_s27, %s448_s27 }
   0xc   :  { %p455_p6 = por %p454_p5, %p453_p4 }
   0xe   :  { %p456_p7 = pnand %p455_p6, %p449_p3 }
  0x10   :  { %459 = shalt.err (!%p456_p7)
}
  0x11   :  { %s533_s28 = smov 128   ;;  %s534_s29 = smov 8  }
  0x12   :  { %34 = dma.hbm_to_vmem [thread:$0]  %s640_s1, 4096, %s29_s19, [#allocation6], %s533_s28, %s533_s28, %s534_s29  }
  0x13   :  { %s535_s7 = smov [#allocation2]   ;;  %s536_s9 = smov [#allocation7]  }
  0x14   :  { %s19_s8 = sshll.u32 %s535_s7, 4  ;;  %s42_s10 = sshll.u32 %s536_s9, 4  ;;  %s20_s8 = int_to_ptr.vmem [resolvable:$true] %s19_s8  ;;  %s43_s10 = int_to_ptr.vmem [resolvable:$true] %s42_s10 }
  0x15   :  { %s460_s13 = scalar_lea.hbm %s639_s0, 256 }
  0x16   :  { %p461_p8 = scmp.ne.s32.totalorder %s639_s0, %s460_s13  ;;  %p464_p9 = scmp.lt.u32.totalorder %s460_s13, %s639_s0 }
  0x18   :  { %p466_p10 = pnand %p464_p9, %p461_p8 }
  0x1a   :  { %469 = shalt.err (!%p466_p10)
}
  0x1b   :  { %s470_s1 = scalar_lea.vmem %s20_s8, 256  ;;  %p475_p12 = scmp.lt.s32.totalorder %s20_s8, %s20_s8 }
  0x1c   :  { %p471_p11 = scmp.ne.s32.totalorder %s20_s8, %s470_s1  ;;  %p476_p13 = scmp.lt.s32.totalorder %s470_s1, %s470_s1 }
  0x1e   :  { %p477_p0 = por %p476_p13, %p475_p12 }
  0x20   :  { %p478_p1 = pnand %p477_p0, %p471_p11 }
  0x22   :  { %481 = shalt.err (!%p478_p1)
}
  0x23   :  { %22 = dma.hbm_to_vmem [thread:$0]  %s639_s0, 256, %s20_s8, [#allocation3]  }
  0x24   :  { %s482_s22 = scalar_lea.hbm %s642_s3, 2048 }
  0x25   :  { %p483_p2 = scmp.ne.s32.totalorder %s642_s3, %s482_s22  ;;  %p486_p3 = scmp.lt.u32.totalorder %s482_s22, %s642_s3 }
  0x27   :  { %p488_p4 = pnand %p486_p3, %p483_p2 }
  0x29   :  { %491 = shalt.err (!%p488_p4)
}
  0x2a   :  { %s492_s27 = scalar_lea.vmem %s43_s10, 2048  ;;  %p497_p6 = scmp.lt.s32.totalorder %s43_s10, %s43_s10 }
  0x2b   :  { %p493_p5 = scmp.ne.s32.totalorder %s43_s10, %s492_s27  ;;  %p498_p7 = scmp.lt.s32.totalorder %s492_s27, %s492_s27 }
  0x2d   :  { %p499_p8 = por %p498_p7, %p497_p6 }
  0x2f   :  { %p500_p9 = pnand %p499_p8, %p493_p5 }
  0x31   :  { %503 = shalt.err (!%p500_p9)
}
  0x32   :  { %48 = dma.hbm_to_vmem [thread:$0]  %s642_s3, 2048, %s43_s10, [#allocation6], %s533_s28, %s533_s28, %s534_s29  }
  0x33   :  { %526 = dma.done.wait [#allocation3], 256  }
  0x34   :  { %527 = vsyncadd [#allocation3], 4294967040 }
  0x35   :  { %528 = dma.done.wait [#allocation6], 6144  }
  0x36   :  { %529 = vsyncadd [#allocation6], 4294961152  ;;  %v537_v0 = vmov 0.0|0.0   ;;  %v78_v1 = vld [vmem:[#allocation5 + $0x80] sm:$0xff]  ;;  %v79_v2 = vld [vmem:[#allocation5 + $0x88] sm:$0xff]  ;;  %vm538_vm0 = vmmov 0  }
  0x37   :  { %403 = vmatprep.subr.bf16.mxu1 %v537_v0  ;;  %v62_v3 = vld [vmem:[#allocation5] sm:$0xff]  ;;  %v371_v4 = vpack.c.bf16 %v79_v2, %v78_v1  ;;  %v63_v5 = vld [vmem:[#allocation5 + $0x8] sm:$0xff]  ;;  %v80_v6 = vld [vmem:[#allocation5 + $0x90] sm:$0xff]  ;;  %s540_s7 = smov [#allocation8]  }
  0x38   :  { %v81_v7 = vld [vmem:[#allocation5 + $0x98] sm:$0xff]  ;;  %v373_v8 = vpack.c.bf16 %v63_v5, %v62_v3  ;;  %v64_v10 = vld [vmem:[#allocation5 + $0x10] sm:$0xff]  ;;  %v82_v12 = vld [vmem:[#allocation5 + $0xa0] sm:$0xff]  ;;  %s272_s8 = sshll.u32 %s540_s7, 4  ;;  %s273_s8 = int_to_ptr.vmem [resolvable:$true] %s272_s8 }
  0x39   :  { %v375_v9 = vpack.c.bf16 %v81_v7, %v80_v6  ;;  %v65_v11 = vld [vmem:[#allocation5 + $0x18] sm:$0xff]  ;;  %372 = vmatprep.subr.bf16.mxu0 %v371_v4  ;;  %v83_v13 = vld [vmem:[#allocation5 + $0xa8] sm:$0xff]  ;;  %v66_v16 = vld [vmem:[#allocation5 + $0x20] sm:$0xff]  ;;  %s504_s9 = scalar_lea.vmem %s273_s8, 128  ;;  %p509_p11 = scmp.lt.s32.totalorder %s273_s8, %s273_s8 }
  0x3a   :  { %374 = vmatpush3.bf16.msra.mxu0 %v373_v8  ;;  %v377_v14 = vpack.c.bf16 %v65_v11, %v64_v10  ;;  %v379_v15 = vpack.c.bf16 %v83_v13, %v82_v12  ;;  %v67_v17 = vld [vmem:[#allocation5 + $0x28] sm:$0xff]  ;;  %v84_v18 = vld [vmem:[#allocation5 + $0xb0] sm:$0xff]  ;;  %v85_v19 = vld [vmem:[#allocation5 + $0xb8] sm:$0xff]  ;;  %v539_v11 = vmov 0.0   ;;  %p505_p10 = scmp.ne.s32.totalorder %s273_s8, %s504_s9  ;;  %p510_p12 = scmp.lt.s32.totalorder %s504_s9, %s504_s9 }
  0x3b   :  { %376 = vmatprep.subr.bf16.mxu0 %v375_v9  ;;  %v381_v20 = vpack.c.bf16 %v67_v17, %v66_v16  ;;  %v383_v21 = vpack.c.bf16 %v85_v19, %v84_v18  ;;  %v68_v22 = vld [vmem:[#allocation5 + $0x30] sm:$0xff]  ;;  %v69_v23 = vld [vmem:[#allocation5 + $0x38] sm:$0xff]  ;;  %v86_v24 = vld [vmem:[#allocation5 + $0xc0] sm:$0xff]  ;;  %368 = vmatprep.mubr.msk.f32.mxu1 %vm538_vm0, %v539_v11 }
  0x3c   :  { %v87_v25 = vld [vmem:[#allocation5 + $0xc8] sm:$0xff]  ;;  %v61_v26 = vld [vmem:[#allocation2 + $0x8] sm:$0xff]  ;;  %v172_v27 = vld [vmem:[#allocation7] sm:$0xff]  ;;  %v385_v29 = vpack.c.bf16 %v69_v23, %v68_v22  ;;  %p511_p13 = por %p510_p12, %p509_p11 }
  0x3d   :  { %165 = vmatprep.mubr.f32.mxu0 %v61_v26  ;;  %v173_v28 = vld [vmem:[#allocation7 + $0x8] sm:$0xff]  ;;  %v174_v31 = vld [vmem:[#allocation7 + $0x10] sm:$0xff]  ;;  %v175_v32 = vld [vmem:[#allocation7 + $0x18] sm:$0xff]  ;;  %v387_v33 = vpack.c.bf16 %v87_v25, %v86_v24 }
  0x3e   :  { %378 = vmatpush3.bf16.msra.mxu0 %v377_v14  ;;  %v404_v30 = vpack.c.bf16 %v173_v28, %v172_v27  ;;  %v70_v34 = vld [vmem:[#allocation5 + $0x40] sm:$0xff]  ;;  %v71_v35 = vld [vmem:[#allocation5 + $0x48] sm:$0xff]  ;;  %v88_v36 = vld [vmem:[#allocation5 + $0xd0] sm:$0xff]  ;;  %v407_v38 = vpack.c.bf16 %v175_v32, %v174_v31  ;;  %p512_p0 = pnand %p511_p13, %p505_p10 }
  0x3f   :  { %380 = vmatprep.subr.bf16.mxu0 %v379_v15  ;;  %v89_v37 = vld [vmem:[#allocation5 + $0xd8] sm:$0xff]  ;;  %v176_v39 = vld [vmem:[#allocation7 + $0x20] sm:$0xff]  ;;  %v177_v40 = vld [vmem:[#allocation7 + $0x28] sm:$0xff]  ;;  %v389_v41 = vpack.c.bf16 %v71_v35, %v70_v34 }
  0x40   :  { %405 = vmatpush3.bf16.msra.mxu1 %v404_v30  ;;  %v391_v42 = vpack.c.bf16 %v89_v37, %v88_v36  ;;  %v72_v43 = vld [vmem:[#allocation5 + $0x50] sm:$0xff]  ;;  %v73_v44 = vld [vmem:[#allocation5 + $0x58] sm:$0xff]  ;;  %v90_v45 = vld [vmem:[#allocation5 + $0xe0] sm:$0xff]  ;;  %v410_v47 = vpack.c.bf16 %v177_v40, %v176_v39 }
  0x41   :  { %406 = vmatprep.subr.bf16.mxu1 %v537_v0  ;;  %v91_v46 = vld [vmem:[#allocation5 + $0xe8] sm:$0xff]  ;;  %v178_v48 = vld [vmem:[#allocation7 + $0x30] sm:$0xff]  ;;  %v179_v49 = vld [vmem:[#allocation7 + $0x38] sm:$0xff]  ;;  %v393_v50 = vpack.c.bf16 %v73_v44, %v72_v43 }
  0x42   :  { %382 = vmatpush3.bf16.msra.mxu0 %v381_v20  ;;  %v395_v51 = vpack.c.bf16 %v91_v46, %v90_v45  ;;  %v74_v52 = vld [vmem:[#allocation5 + $0x60] sm:$0xff]  ;;  %v75_v53 = vld [vmem:[#allocation5 + $0x68] sm:$0xff]  ;;  %v92_v54 = vld [vmem:[#allocation5 + $0xf0] sm:$0xff]  ;;  %v413_v56 = vpack.c.bf16 %v179_v49, %v178_v48 }
  0x43   :  { %384 = vmatprep.subr.bf16.mxu0 %v383_v21  ;;  %v93_v55 = vld [vmem:[#allocation5 + $0xf8] sm:$0xff]  ;;  %v397_v57 = vpack.c.bf16 %v75_v53, %v74_v52  ;;  %v76_v59 = vld [vmem:[#allocation5 + $0x70] sm:$0xff]  ;;  %v180_v63 = vld [vmem:[#allocation7 + $0x40] sm:$0xff] }
  0x44   :  { %408 = vmatpush3.bf16.msra.mxu1 %v407_v38  ;;  %v399_v58 = vpack.c.bf16 %v93_v55, %v92_v54  ;;  %v77_v60 = vld [vmem:[#allocation5 + $0x78] sm:$0xff]  ;;  %v60_v62 = vld [vmem:[#allocation2] sm:$0xff]  ;;  %v181_v1 = vld [vmem:[#allocation7 + $0x48] sm:$0xff] }
  0x45   :  { %409 = vmatprep.subr.bf16.mxu1 %v537_v0  ;;  %v401_v61 = vpack.c.bf16 %v77_v60, %v76_v59  ;;  %v416_v2 = vpack.c.bf16 %v181_v1, %v180_v63  ;;  %v182_v3 = vld [vmem:[#allocation7 + $0x50] sm:$0xff]  ;;  %v183_v4 = vld [vmem:[#allocation7 + $0x58] sm:$0xff]  ;;  %v184_v6 = vld [vmem:[#allocation7 + $0x60] sm:$0xff] }
  0x46   :  { %386 = vmatpush3.bf16.msra.mxu0 %v385_v29  ;;  %v419_v5 = vpack.c.bf16 %v183_v4, %v182_v3  ;;  %v185_v7 = vld [vmem:[#allocation7 + $0x68] sm:$0xff]  ;;  %v186_v9 = vld [vmem:[#allocation7 + $0x70] sm:$0xff]  ;;  %v187_v10 = vld [vmem:[#allocation7 + $0x78] sm:$0xff] }
  0x47   :  { %388 = vmatprep.subr.bf16.mxu0 %v387_v33  ;;  %v422_v8 = vpack.c.bf16 %v185_v7, %v184_v6  ;;  %v425_v12 = vpack.c.bf16 %v187_v10, %v186_v9  ;;  %v282_v14 = vld [vmem:[%s641_s2] ss:$0 sm:$0xff] }
  0x48   :  { %411 = vmatpush3.bf16.msra.mxu1 %v410_v47  ;;  %v283_v19 = vld [vmem:[%s643_s4] ss:$0 sm:$0xff] }
  0x49   :  { %412 = vmatprep.subr.bf16.mxu1 %v537_v0 }
  0x4a   :  { %390 = vmatpush3.bf16.msra.mxu0 %v389_v41 }
  0x4b   :  { %392 = vmatprep.subr.bf16.mxu0 %v391_v42 }
  0x4c   :  { %414 = vmatpush3.bf16.msra.mxu1 %v413_v56 }
  0x4d   :  { %415 = vmatprep.subr.bf16.mxu1 %v537_v0 }
  0x4e   :  { %394 = vmatpush3.bf16.msra.mxu0 %v393_v50 }
  0x4f   :  { %396 = vmatprep.subr.bf16.mxu0 %v395_v51 }
  0x50   :  { %417 = vmatpush3.bf16.msra.mxu1 %v416_v2 }
  0x51   :  { %418 = vmatprep.subr.bf16.mxu1 %v537_v0 }
  0x52   :  { %398 = vmatpush3.bf16.msra.mxu0 %v397_v57 }
  0x53   :  { %400 = vmatprep.subr.bf16.mxu0 %v399_v58 }
  0x54   :  { %420 = vmatpush3.bf16.msra.mxu1 %v419_v5 }
  0x55   :  { %421 = vmatprep.subr.bf16.mxu1 %v537_v0 }
  0x56   :  { %402 = vmatpush3.bf16.msra.mxu0 %v401_v61 }
  0x58   :  { %423 = vmatpush3.bf16.msra.mxu1 %v422_v8 }
  0x59   :  { %166 = vmatmul.mubr.f32.vlgmr.msra.gmra.mrb[0].mxu0 %v60_v62  ;;  %424 = vmatprep.subr.bf16.mxu1 %v537_v0 }
  0x5c   :  { %426 = vmatpush3.bf16.msra.mxu1 %v425_v12 }
 0x12c   :  { %v316_v13 = vpop.f32.mrb[0].mxu0 }
 0x12d   :  { %v317_v15 = vpop.f32.mrb[1].mxu0 }
 0x12e   :  { %v318_v16 = vadd.f32 %v317_v15, %v316_v13 }
 0x130   :  { %v168_v17 = vadd.f32 %v318_v16, %v282_v14 }
 0x132   :  { %436 = vtanh.f32 %v168_v17 }
 0x13c   :  { %v437_v18 = vpop.eup %436 }
 0x13d   :  { %369 = vmatmul.mubr.f32.vlgmr.msra.gmra.mrb[0].mxu1 %v437_v18 }
 0x210   :  { %v261_v20 = vpop.f32.mrb[0].mxu1 }
 0x211   :  { %v262_v0 = vadd.f32 %v283_v19, %v261_v20  ;;  %v370_v21 = vpop.f32.mrb[1].mxu1 }
 0x213   :  { %265 = vst [vmem:[#allocation8] sm:$0xff] %v262_v0 }
 0x214   :  { %515 = shalt.err (!%p512_p0)
}
 0x215   :  { %s516_s11 = scalar_lea.hbm %s644_s5, 128 }
 0x216   :  { %p517_p1 = scmp.ne.s32.totalorder %s644_s5, %s516_s11  ;;  %p520_p2 = scmp.lt.u32.totalorder %s516_s11, %s644_s5 }
 0x218   :  { %p522_p3 = pnand %p520_p2, %p517_p1 }
 0x21a   :  { %525 = shalt.err (!%p522_p3)
}
 0x21b   :  { %275 = dma.vmem_to_hbm [thread:$0]  %s273_s8, 128, %s644_s5, [#allocation4]  }
 0x21c   :  { %530 = dma.done.wait [#allocation4], 128  }
 0x21d   :  { %531 = vsyncadd [#allocation4], 4294967168 }
 0x21e   :  { %279 = vsyncpa [#allocation3], 1 }
 0x21f   :  { %280 = vsyncpa [#allocation6], 1 }
 0x220   :  { %281 = vsyncpa [#allocation4], 1 }

</bundles_post_ra>
